<compile_context>
chip_gen: v7x
topology: tpu7x:2x2x1
jax: 0.10.0
libtpu: 0.0.40
codegen_flags: <defaults>
</compile_context>

<pallas_src>
import functools

import jax
import jax.numpy as jnp
import numpy as np
from jax.experimental import pallas as pl
from jax.experimental.pallas import tpu as pltpu


def _controller_kernel(x_ref, w_emb_ref, b_emb_ref,
                       w_lstm_ref, b_lstm_ref,
                       h0_ref, c0_ref,
                       w_act_ref, b_act_ref,
                       *rest, hidden_dim, final_proj):
    """Fused: embed-Linear + ReLU -> 1-step LSTM cell -> ReLU -> action head(s)."""
    if final_proj:
        w_h2a_ref, b_h2a_ref, out_ref, h1_ref, c1_ref = rest
    else:
        out_ref, h1_ref, c1_ref = rest

    H = hidden_dim

    # Read the (aliased) hidden state up front: h0/c0 share buffers with h1/c1.
    h0 = h0_ref[...]
    c0 = c0_ref[...]

    # embeds = relu(x @ W_emb^T + b_emb)   (weights arrive pre-transposed)
    emb = (jnp.dot(x_ref[...], w_emb_ref[...], preferred_element_type=jnp.float32)
           + b_emb_ref[...])
    emb = jnp.maximum(emb, 0.0)

    # Single fused LSTM gate matmul:
    #   gates = [emb, h0] @ [W_ih^T ; W_hh^T] + (b_ih + b_hh)
    xh = jnp.concatenate([emb, h0], axis=-1)                     # (B, E+H)
    gates = (jnp.dot(xh, w_lstm_ref[...], preferred_element_type=jnp.float32)
             + b_lstm_ref[...])                                  # (B, 4H)

    # Nonlinearities on the full (B, 4H) register (EUP), slice afterwards.
    sig = jax.nn.sigmoid(gates)
    tah = jnp.tanh(gates)
    i_g = sig[:, 0 * H:1 * H]
    f_g = sig[:, 1 * H:2 * H]
    g_g = tah[:, 2 * H:3 * H]
    o_g = sig[:, 3 * H:4 * H]

    c1 = f_g * c0 + i_g * g_g
    h1 = o_g * jnp.tanh(c1)
    c1_ref[...] = c1
    h1_ref[...] = h1

    # lstm_out = relu(h1); per-idx action head.
    lstm_out = jnp.maximum(h1, 0.0)
    act = (jnp.dot(lstm_out, w_act_ref[...], preferred_element_type=jnp.float32)
           + b_act_ref[...])

    if final_proj:  # idx == 6 path: hidden2action(relu(action_space))
        act = jnp.maximum(act, 0.0)
        act = (jnp.dot(act, w_h2a_ref[...], preferred_element_type=jnp.float32)
               + b_h2a_ref[...])

    out_ref[...] = act


@functools.lru_cache(maxsize=None)
def _build_controller_call(batch, hidden_dim, out_features, final_proj):
    """Build (once per static signature) the jitted pallas_call for one idx."""
    n_inputs = 9 + (2 if final_proj else 0)
    vmem_spec = pl.BlockSpec(memory_space=pltpu.MemorySpace.VMEM)

    out_shapes = (
        jax.ShapeDtypeStruct((batch, out_features), jnp.float32),  # action_scores
        jax.ShapeDtypeStruct((batch, hidden_dim), jnp.float32),    # h1
        jax.ShapeDtypeStruct((batch, hidden_dim), jnp.float32),    # c1
    )
    kernel = functools.partial(_controller_kernel,
                               hidden_dim=hidden_dim, final_proj=final_proj)
    call = pl.pallas_call(
        kernel,
        in_specs=[vmem_spec] * n_inputs,
        out_specs=tuple([vmem_spec] * 3),
        out_shape=out_shapes,
        # h0 (input 5) -> h1 (output 1), c0 (input 6) -> c1 (output 2)
        input_output_aliases={5: 1, 6: 2},
    )
    return jax.jit(call)


def lstm_controller_forward(params, x, hidden, idx):
    """Python wrapper: selects per-idx (pre-transposed) weights, calls the kernel."""
    h0, c0 = hidden
    B = x.shape[0]
    H = params["hidden_dim"]
    final_proj = (idx == 6)           # NOTE: idx must be a Python int.

    w_emb, b_emb = params["emb_wT"][idx], params["emb_b2"][idx]
    w_act, b_act = params["act_wT"][idx], params["act_b2"][idx]

    inputs = [
        x,
        w_emb, b_emb,
        params["w_lstmT"], params["b_lstm2"],
        h0, c0,
        w_act, b_act,
    ]
    out_features = w_act.shape[1]
    if final_proj:
        inputs += [params["h2a_wT"], params["h2a_b2"]]
        out_features = params["h2a_wT"].shape[1]

    call = _build_controller_call(B, H, out_features, final_proj)
    scores, h1, c1 = call(*inputs)
    return scores, (h1, c1)


def reference_forward(params, x, hidden, idx):
    """Pure-JAX reference mirroring the PyTorch forward exactly (unfused weights)."""
    h0, c0 = hidden
    H = params["hidden_dim"]
    emb = jax.nn.relu(x @ params["emb_wT"][idx] + params["emb_b2"][idx])
    gates = (emb @ params["w_ihT"] + params["b_ih"]
             + h0 @ params["w_hhT"] + params["b_hh"])
    i = jax.nn.sigmoid(gates[:, :H])
    f = jax.nn.sigmoid(gates[:, H:2 * H])
    g = jnp.tanh(gates[:, 2 * H:3 * H])
    o = jax.nn.sigmoid(gates[:, 3 * H:])
    c1 = f * c0 + i * g
    h1 = o * jnp.tanh(c1)
    lstm_out = jax.nn.relu(h1)
    act = lstm_out @ params["act_wT"][idx] + params["act_b2"][idx]
    if idx == 6:
        act = jax.nn.relu(act) @ params["h2a_wT"] + params["h2a_b2"]
    return act, (h1, c1)


def init_params(key, embedding_dim, hidden_dim, channel_conf, num_action):
    """Initialize PyTorch-layout weights, then store kernel-ready layouts:
    pre-transposed matrices, (1, N) biases, and the fused LSTM gate weight."""
    n = len(channel_conf)
    keys = jax.random.split(key, 4 * n + 8)
    ki = iter(range(len(keys)))

    def lin(out_f, in_f):
        w = jax.random.normal(keys[next(ki)], (out_f, in_f), jnp.float32) * 0.1
        b = jax.random.normal(keys[next(ki)], (out_f,), jnp.float32) * 0.1
        return w, b

    emb_wT, emb_b2 = [], []
    for c in channel_conf:                       # self.layers
        w, b = lin(embedding_dim, c)
        emb_wT.append(jnp.transpose(w))
        emb_b2.append(b[None, :])

    act_wT, act_b2 = [], []
    for i, _ in enumerate(channel_conf):         # self.hidden_action_array
        out_f = hidden_dim if i == n - 1 else num_action
        w, b = lin(out_f, hidden_dim)
        act_wT.append(jnp.transpose(w))
        act_b2.append(b[None, :])

    w_ih, b_ih = lin(4 * hidden_dim, embedding_dim)   # nn.LSTM weight_ih_l0 / bias_ih_l0
    w_hh, b_hh = lin(4 * hidden_dim, hidden_dim)      # nn.LSTM weight_hh_l0 / bias_hh_l0
    h2a_w, h2a_b = lin(num_action, hidden_dim)        # self.hidden2action

    # Fused, pre-transposed LSTM gate weight: [emb, h] @ W_lstm + b_lstm.
    w_lstmT = jnp.concatenate([jnp.transpose(w_ih), jnp.transpose(w_hh)], axis=0)  # (E+H, 4H)
    b_lstm2 = (b_ih + b_hh)[None, :]                                               # (1, 4H)

    return dict(hidden_dim=hidden_dim, num_action=num_action,
                emb_wT=emb_wT, emb_b2=emb_b2,
                act_wT=act_wT, act_b2=act_b2,
                w_lstmT=w_lstmT, b_lstm2=b_lstm2,
                # unfused copies kept only for the pure-JAX reference check:
                w_ihT=jnp.transpose(w_ih), w_hhT=jnp.transpose(w_hh),
                b_ih=b_ih, b_hh=b_hh,
                h2a_wT=jnp.transpose(h2a_w), h2a_b2=h2a_b[None, :])


if __name__ == "__main__":
    embedding_dim = 32
    hidden_dim = 32
    num_action = 8
    batch_size = 2
    channel_conf = [4, 8, 16, 8, 4, 8, 16]   # 7 layers, so the idx==6 branch exists

    key = jax.random.PRNGKey(0)
    pkey, x1key, x2key = jax.random.split(key, 3)
    params = init_params(pkey, embedding_dim, hidden_dim, channel_conf, num_action)

    def fresh_hidden():
        # init_hidden(batch_size): zeros (num_layers=1 dim squeezed -> (B, H))
        return (jnp.zeros((batch_size, hidden_dim), jnp.float32),
                jnp.zeros((batch_size, hidden_dim), jnp.float32))

    # Exercise both code paths: a plain idx and the idx==6 hidden2action path.
    for idx, xkey in ((1, x1key), (6, x2key)):
        x = jax.random.normal(xkey, (batch_size, channel_conf[idx]), jnp.float32)

        scores, new_hidden = lstm_controller_forward(params, x, fresh_hidden(), idx)
        scores = jax.block_until_ready(scores)
        jax.block_until_ready(new_hidden)

        ref_scores, ref_hidden = reference_forward(params, x, fresh_hidden(), idx)
        np.testing.assert_allclose(np.asarray(scores), np.asarray(ref_scores),
                                   rtol=1e-3, atol=1e-3)
        np.testing.assert_allclose(np.asarray(new_hidden[0]), np.asarray(ref_hidden[0]),
                                   rtol=1e-3, atol=1e-3)
        np.testing.assert_allclose(np.asarray(new_hidden[1]), np.asarray(ref_hidden[1]),
                                   rtol=1e-3, atol=1e-3)

    print("KERNEL_OK")
</pallas_src>

<mosaic_0001>
module attributes {stable_mosaic.version = 11 : i64} {
  func.func @_controller_kernel(%arg0: memref<2x8xf32, #tpu.memory_space<vmem>>, %arg1: memref<8x32xf32, #tpu.memory_space<vmem>>, %arg2: memref<1x32xf32, #tpu.memory_space<vmem>>, %arg3: memref<64x128xf32, #tpu.memory_space<vmem>>, %arg4: memref<1x128xf32, #tpu.memory_space<vmem>>, %arg5: memref<2x32xf32, #tpu.memory_space<vmem>>, %arg6: memref<2x32xf32, #tpu.memory_space<vmem>>, %arg7: memref<32x8xf32, #tpu.memory_space<vmem>>, %arg8: memref<1x8xf32, #tpu.memory_space<vmem>>, %arg9: memref<2x8xf32, #tpu.memory_space<vmem>>, %arg10: memref<2x32xf32, #tpu.memory_space<vmem>>, %arg11: memref<2x32xf32, #tpu.memory_space<vmem>>) attributes {dimension_semantics = [], scalar_prefetch = 0 : i64, scratch_operands = 0 : i64, tpu.core_type = #tpu.core_type<tc>} {
    %c0 = arith.constant 0 : index
    %c0_0 = arith.constant 0 : index
    %0 = vector.load %arg5[%c0, %c0_0] : memref<2x32xf32, #tpu.memory_space<vmem>>, vector<2x32xf32>
    %c0_1 = arith.constant 0 : index
    %c0_2 = arith.constant 0 : index
    %1 = vector.load %arg6[%c0_1, %c0_2] : memref<2x32xf32, #tpu.memory_space<vmem>>, vector<2x32xf32>
    %c0_3 = arith.constant 0 : index
    %c0_4 = arith.constant 0 : index
    %2 = vector.load %arg0[%c0_3, %c0_4] : memref<2x8xf32, #tpu.memory_space<vmem>>, vector<2x8xf32>
    %c0_5 = arith.constant 0 : index
    %c0_6 = arith.constant 0 : index
    %3 = vector.load %arg1[%c0_5, %c0_6] : memref<8x32xf32, #tpu.memory_space<vmem>>, vector<8x32xf32>
    %cst = arith.constant dense<0.000000e+00> : vector<2x32xf32>
    %4 = tpu.matmul %2, %3, %cst {dimension_numbers = #tpu.dot_dimension_numbers<[1], [0], [0], [1], [0, 0, 1, 1], [], []>} : vector<2x8xf32>, vector<8x32xf32>, vector<2x32xf32> -> vector<2x32xf32>
    %c0_7 = arith.constant 0 : index
    %c0_8 = arith.constant 0 : index
    %5 = vector.load %arg2[%c0_7, %c0_8] : memref<1x32xf32, #tpu.memory_space<vmem>>, vector<1x32xf32>
    %6 = vector.broadcast %5 : vector<1x32xf32> to vector<2x32xf32>
    %7 = arith.addf %4, %6 : vector<2x32xf32>
    %cst_9 = arith.constant 0.000000e+00 : f32
    %8 = vector.broadcast %cst_9 : f32 to vector<2x32xf32>
    %9 = arith.maximumf %7, %8 : vector<2x32xf32>
    %10 = tpu.concatenate %9, %0 in 1 : vector<2x32xf32>, vector<2x32xf32> -> vector<2x64xf32>
    %c0_10 = arith.constant 0 : index
    %c0_11 = arith.constant 0 : index
    %11 = vector.load %arg3[%c0_10, %c0_11] : memref<64x128xf32, #tpu.memory_space<vmem>>, vector<64x128xf32>
    %cst_12 = arith.constant dense<0.000000e+00> : vector<2x128xf32>
    %12 = tpu.matmul %10, %11, %cst_12 {dimension_numbers = #tpu.dot_dimension_numbers<[1], [0], [0], [1], [0, 0, 1, 1], [], []>} : vector<2x64xf32>, vector<64x128xf32>, vector<2x128xf32> -> vector<2x128xf32>
    %c0_13 = arith.constant 0 : index
    %c0_14 = arith.constant 0 : index
    %13 = vector.load %arg4[%c0_13, %c0_14] : memref<1x128xf32, #tpu.memory_space<vmem>>, vector<1x128xf32>
    %14 = vector.broadcast %13 : vector<1x128xf32> to vector<2x128xf32>
    %15 = arith.addf %12, %14 : vector<2x128xf32>
    %16 = arith.negf %15 : vector<2x128xf32>
    %17 = math.exp %16 : vector<2x128xf32>
    %cst_15 = arith.constant 1.000000e+00 : f32
    %18 = vector.broadcast %cst_15 : f32 to vector<2x128xf32>
    %19 = arith.addf %18, %17 : vector<2x128xf32>
    %20 = arith.divf %18, %19 : vector<2x128xf32>
    %21 = math.tanh %15 : vector<2x128xf32>
    %22 = vector.extract_strided_slice %20 {offsets = [0, 0], sizes = [2, 32], strides = [1, 1]} : vector<2x128xf32> to vector<2x32xf32>
    %23 = vector.extract_strided_slice %20 {offsets = [0, 32], sizes = [2, 32], strides = [1, 1]} : vector<2x128xf32> to vector<2x32xf32>
    %24 = vector.extract_strided_slice %21 {offsets = [0, 64], sizes = [2, 32], strides = [1, 1]} : vector<2x128xf32> to vector<2x32xf32>
    %25 = vector.extract_strided_slice %20 {offsets = [0, 96], sizes = [2, 32], strides = [1, 1]} : vector<2x128xf32> to vector<2x32xf32>
    %26 = arith.mulf %23, %1 : vector<2x32xf32>
    %27 = arith.mulf %22, %24 : vector<2x32xf32>
    %28 = arith.addf %26, %27 : vector<2x32xf32>
    %29 = math.tanh %28 : vector<2x32xf32>
    %30 = arith.mulf %25, %29 : vector<2x32xf32>
    %c0_16 = arith.constant 0 : index
    %c0_17 = arith.constant 0 : index
    %31 = vector.load %arg11[%c0_16, %c0_17] : memref<2x32xf32, #tpu.memory_space<vmem>>, vector<2x32xf32>
    tpu.vector_store %arg11[%c0_16, %c0_17], %28 {strides = array<i32>} : memref<2x32xf32, #tpu.memory_space<vmem>>, vector<2x32xf32>,
    %c0_18 = arith.constant 0 : index
    %c0_19 = arith.constant 0 : index
    %32 = vector.load %arg10[%c0_18, %c0_19] : memref<2x32xf32, #tpu.memory_space<vmem>>, vector<2x32xf32>
    tpu.vector_store %arg10[%c0_18, %c0_19], %30 {strides = array<i32>} : memref<2x32xf32, #tpu.memory_space<vmem>>, vector<2x32xf32>,
    %cst_20 = arith.constant 0.000000e+00 : f32
    %33 = vector.broadcast %cst_20 : f32 to vector<2x32xf32>
    %34 = arith.maximumf %30, %33 : vector<2x32xf32>
    %c0_21 = arith.constant 0 : index
    %c0_22 = arith.constant 0 : index
    %35 = vector.load %arg7[%c0_21, %c0_22] : memref<32x8xf32, #tpu.memory_space<vmem>>, vector<32x8xf32>
    %cst_23 = arith.constant dense<0.000000e+00> : vector<2x8xf32>
    %36 = tpu.matmul %34, %35, %cst_23 {dimension_numbers = #tpu.dot_dimension_numbers<[1], [0], [0], [1], [0, 0, 1, 1], [], []>} : vector<2x32xf32>, vector<32x8xf32>, vector<2x8xf32> -> vector<2x8xf32>
    %c0_24 = arith.constant 0 : index
    %c0_25 = arith.constant 0 : index
    %37 = vector.load %arg8[%c0_24, %c0_25] : memref<1x8xf32, #tpu.memory_space<vmem>>, vector<1x8xf32>
    %38 = vector.broadcast %37 : vector<1x8xf32> to vector<2x8xf32>
    %39 = arith.addf %36, %38 : vector<2x8xf32>
    %c0_26 = arith.constant 0 : index
    %c0_27 = arith.constant 0 : index
    %40 = vector.load %arg9[%c0_26, %c0_27] : memref<2x8xf32, #tpu.memory_space<vmem>>, vector<2x8xf32>
    tpu.vector_store %arg9[%c0_26, %c0_27], %39 {strides = array<i32>} : memref<2x8xf32, #tpu.memory_space<vmem>>, vector<2x8xf32>,
    return
  }
}

</mosaic_0001>

<bundles_post_ra>
// kernel: tpu_custom_call.1
= control target key start
LH: loop header
LB: loop body
LE: loop exit
PB: predicated region body
PF: predicated region fallthrough
CT: control target
= control target key end

     0   :  { %17 = vsyncpa [#allocation3], 0  ;;  %s960_s0 = inlined_call_operand.vmem [shape: f32[2,8], index: 0, kind: input, shape index: {}]   ;;  %s961_s1 = inlined_call_operand.vmem [shape: f32[8,32], index: 1, kind: input, shape index: {}]   ;;  %s962_s2 = inlined_call_operand.hbm [shape: f32[1,32], index: 2, kind: input, shape index: {}]   ;;  %s963_s3 = inlined_call_operand.vmem [shape: f32[64,128], index: 3, kind: input, shape index: {}]   ;;  %s964_s4 = inlined_call_operand.hbm [shape: f32[1,128], index: 4, kind: input, shape index: {}]   ;;  %s965_s5 = inlined_call_operand.hbm [shape: f32[2,32], index: 5, kind: input, shape index: {}, may-alias: {5,10}]   ;;  %s966_s6 = inlined_call_operand.hbm [shape: f32[2,32], index: 6, kind: input, shape index: {}, may-alias: {6,11}]   ;;  %s967_s7 = inlined_call_operand.vmem [shape: f32[32,8], index: 7, kind: input, shape index: {}]   ;;  %s968_s8 = inlined_call_operand.hbm [shape: f32[1,8], index: 8, kind: input, shape index: {}]   ;;  %s969_s9 = inlined_call_operand.hbm [shape: f32[2,8], index: 9, kind: output, shape index: {0}]   ;;  %s970_s10 = inlined_call_operand.hbm [shape: f32[2,32], index: 10, kind: output, shape index: {1}, may-alias: {5,10}]   ;;  %s971_s11 = inlined_call_operand.hbm [shape: f32[2,32], index: 11, kind: output, shape index: {2}, may-alias: {6,11}]  }
   0x1   :  { %18 = vsyncpa [#allocation6], 0 }
   0x2   :  { %19 = vsyncpa [#allocation9], 0 }
   0x3   :  { %20 = vsyncpa [#allocation4], 0 }
   0x4   :  { %21 = vsyncpa [#allocation13], 0  ;;  %s732_s17 = smov [#allocation5]   ;;  %s733_s19 = smov [#allocation8]  }
   0x5   :  { %s44_s18 = sshll.u32 %s732_s17, 4  ;;  %s64_s20 = sshll.u32 %s733_s19, 4  ;;  %s45_s18 = int_to_ptr.vmem [resolvable:$true] %s44_s18  ;;  %s65_s20 = int_to_ptr.vmem [resolvable:$true] %s64_s20 }
   0x6   :  { %s546_s23 = scalar_lea.hbm %s964_s4, 16 }
   0x7   :  { %p547_p0 = scmp.ne.s32.totalorder %s964_s4, %s546_s23  ;;  %p550_p1 = scmp.lt.u32.totalorder %s546_s23, %s964_s4 }
   0x9   :  { %p552_p2 = pnand %p550_p1, %p547_p0 }
   0xb   :  { %555 = shalt.err (!%p552_p2)
}
   0xc   :  { %s556_s28 = scalar_lea.vmem %s45_s18, 16  ;;  %s560_s29 = scalar_lea.vmem %s45_s18, 32 }
   0xd   :  { %p557_p3 = scmp.ne.s32.totalorder %s45_s18, %s556_s28  ;;  %p561_p4 = scmp.lt.s32.totalorder %s45_s18, %s45_s18 }
   0xe   :  { %p562_p5 = scmp.lt.s32.totalorder %s560_s29, %s556_s28 }
  0x10   :  { %p563_p6 = por %p562_p5, %p561_p4 }
  0x12   :  { %p564_p7 = pnand %p563_p6, %p557_p3 }
  0x14   :  { %567 = shalt.err (!%p564_p7)
}
  0x15   :  { %47 = dma.hbm_to_vmem [thread:$0]  %s964_s4, 16, %s45_s18, [#allocation6]  }
  0x16   :  { %s568_s15 = scalar_lea.hbm %s966_s6, 32 }
  0x17   :  { %p569_p8 = scmp.ne.s32.totalorder %s966_s6, %s568_s15  ;;  %p572_p9 = scmp.lt.u32.totalorder %s568_s15, %s966_s6 }
  0x19   :  { %p574_p10 = pnand %p572_p9, %p569_p8 }
  0x1b   :  { %577 = shalt.err (!%p574_p10)
}
  0x1c   :  { %s578_s22 = scalar_lea.vmem %s65_s20, 32  ;;  %p583_p12 = scmp.lt.s32.totalorder %s65_s20, %s65_s20 }
  0x1d   :  { %p579_p11 = scmp.ne.s32.totalorder %s65_s20, %s578_s22  ;;  %p584_p13 = scmp.lt.s32.totalorder %s578_s22, %s578_s22 }
  0x1f   :  { %p585_p0 = por %p584_p13, %p583_p12 }
  0x21   :  { %p586_p1 = pnand %p585_p0, %p579_p11 }
  0x23   :  { %589 = shalt.err (!%p586_p1)
}
  0x24   :  { %67 = dma.hbm_to_vmem [thread:$0]  %s966_s6, 32, %s65_s20, [#allocation9]  }
  0x25   :  { %s734_s23 = smov [#allocation2]   ;;  %s735_s25 = smov [#allocation7]  }
  0x26   :  { %s32_s24 = sshll.u32 %s734_s23, 4  ;;  %s54_s26 = sshll.u32 %s735_s25, 4  ;;  %s33_s24 = int_to_ptr.vmem [resolvable:$true] %s32_s24  ;;  %s55_s26 = int_to_ptr.vmem [resolvable:$true] %s54_s26 }
  0x27   :  { %s590_s29 = scalar_lea.hbm %s962_s2, 16 }
  0x28   :  { %p591_p2 = scmp.ne.s32.totalorder %s962_s2, %s590_s29  ;;  %p594_p3 = scmp.lt.u32.totalorder %s590_s29, %s962_s2 }
  0x2a   :  { %p596_p4 = pnand %p594_p3, %p591_p2 }
  0x2c   :  { %599 = shalt.err (!%p596_p4)
}
  0x2d   :  { %s600_s6 = scalar_lea.vmem %s33_s24, 16  ;;  %s604_s20 = scalar_lea.vmem %s33_s24, 32 }
  0x2e   :  { %p601_p5 = scmp.ne.s32.totalorder %s33_s24, %s600_s6  ;;  %p605_p6 = scmp.lt.s32.totalorder %s33_s24, %s33_s24 }
  0x2f   :  { %p606_p7 = scmp.lt.s32.totalorder %s604_s20, %s600_s6 }
  0x31   :  { %p607_p8 = por %p606_p7, %p605_p6 }
  0x33   :  { %p608_p9 = pnand %p607_p8, %p601_p5 }
  0x35   :  { %611 = shalt.err (!%p608_p9)
}
  0x36   :  { %35 = dma.hbm_to_vmem [thread:$0]  %s962_s2, 16, %s33_s24, [#allocation3]  }
  0x37   :  { %s612_s21 = scalar_lea.hbm %s965_s5, 32 }
  0x38   :  { %p613_p10 = scmp.ne.s32.totalorder %s965_s5, %s612_s21  ;;  %p616_p11 = scmp.lt.u32.totalorder %s612_s21, %s965_s5 }
  0x3a   :  { %p618_p12 = pnand %p616_p11, %p613_p10 }
  0x3c   :  { %621 = shalt.err (!%p618_p12)
}
  0x3d   :  { %s622_s25 = scalar_lea.vmem %s55_s26, 32  ;;  %p627_p0 = scmp.lt.s32.totalorder %s55_s26, %s55_s26 }
  0x3e   :  { %p623_p13 = scmp.ne.s32.totalorder %s55_s26, %s622_s25  ;;  %p628_p1 = scmp.lt.s32.totalorder %s622_s25, %s622_s25 }
  0x40   :  { %p629_p2 = por %p628_p1, %p627_p0 }
  0x42   :  { %p630_p3 = pnand %p629_p2, %p623_p13 }
  0x44   :  { %633 = shalt.err (!%p630_p3)
}
  0x45   :  { %57 = dma.hbm_to_vmem [thread:$0]  %s965_s5, 32, %s55_s26, [#allocation6]  }
  0x46   :  { %s736_s27 = smov [#allocation10]   ;;  %s634_s12 = scalar_lea.hbm %s968_s8, 16 }
  0x47   :  { %s76_s28 = sshll.u32 %s736_s27, 4  ;;  %p635_p4 = scmp.ne.s32.totalorder %s968_s8, %s634_s12  ;;  %s77_s28 = int_to_ptr.vmem [resolvable:$true] %s76_s28 }
  0x48   :  { %p638_p5 = scmp.lt.u32.totalorder %s634_s12, %s968_s8 }
  0x4a   :  { %p640_p6 = pnand %p638_p5, %p635_p4 }
  0x4c   :  { %643 = shalt.err (!%p640_p6)
}
  0x4d   :  { %s644_s15 = scalar_lea.vmem %s77_s28, 16  ;;  %s648_s5 = scalar_lea.vmem %s77_s28, 32 }
  0x4e   :  { %p645_p7 = scmp.ne.s32.totalorder %s77_s28, %s644_s15  ;;  %p649_p8 = scmp.lt.s32.totalorder %s77_s28, %s77_s28 }
  0x4f   :  { %p650_p9 = scmp.lt.s32.totalorder %s648_s5, %s644_s15 }
  0x51   :  { %p651_p10 = por %p650_p9, %p649_p8 }
  0x53   :  { %p652_p11 = pnand %p651_p10, %p645_p7 }
  0x55   :  { %655 = shalt.err (!%p652_p11)
}
  0x56   :  { %79 = dma.hbm_to_vmem [thread:$0]  %s968_s8, 16, %s77_s28, [#allocation9]  }
  0x57   :  { %722 = dma.done.wait [#allocation3], 16  }
  0x58   :  { %723 = vsyncadd [#allocation3], 4294967280 }
  0x59   :  { %724 = dma.done.wait [#allocation6], 48  }
  0x5a   :  { %725 = vsyncadd [#allocation6], 4294967248 }
  0x5b   :  { %726 = dma.done.wait [#allocation9], 48  }
  0x5c   :  { %727 = vsyncadd [#allocation9], 4294967248  ;;  %v737_v0 = vmov 0.0   ;;  %vm738_vm0 = vmmov 0   ;;  %v739_v1 = vmov 0.0|0.0   ;;  %vm106_vm1 = vcmask 64512  }
  0x5d   :  { %471 = vmatprep.subr.mxu0 %v737_v0  ;;  %473 = vmatprep.mubr.msk.f32.mxu0 %vm738_vm0, %v737_v0  ;;  %v98_v2 = vld [vmem:[%s961_s1] sm:$0xff]  ;;  %s740_s22 = smov 32   ;;  %v188_v6 = vld [vmem:[%s963_s3 + $0x8] sm:$0xff]  ;;  %v189_v7 = vld [vmem:[%s963_s3 + $0x10] sm:$0xff]  ;;  %vm185_vm2 = vcmask 261120   ;;  %vm202_vm3 = vcmask 523264  }
  0x5e   :  { %506 = vmatprep.subr.bf16.mxu1 %v739_v1  ;;  %492 = vmatprep.mubr.msk.f32.mxu1 %vm738_vm0, %v737_v0  ;;  %v97_v3 = vld [vmem:[%s960_s0] sm:$0x3]  ;;  %v95_v4 = vld [vmem:[#allocation7] sm:$0x3]  ;;  %v190_v9 = vld [vmem:[%s963_s3 + $0x18] sm:$0xff]  ;;  %s742_s21 = smov 96  }
  0x5f   :  { %472 = vmatpush3.msra.mxu0 %v98_v2  ;;  %182 = vrot.lane.b32.xlu0 %v95_v4, %s740_s22  ;;  %v187_v5 = vld [vmem:[%s963_s3] sm:$0xff]  ;;  %v510_v10 = vpack.c.bf16 %v190_v9, %v189_v7  ;;  %v192_v12 = vld [vmem:[%s963_s3 + $0x28] sm:$0xff]  ;;  %v193_v14 = vld [vmem:[%s963_s3 + $0x30] sm:$0xff]  ;;  %vm308_vm4 = vcmask 254976  }
  0x60   :  { %474 = vmatmul.mubr.msk.f32.vlgmr.msra.gmra.mrb[0].mxu0 %vm106_vm1, %v97_v3  ;;  %v507_v8 = vpack.c.bf16 %v188_v6, %v187_v5  ;;  %518 = vmatprep.subr.bf16.mxu0 %v739_v1  ;;  %v191_v11 = vld [vmem:[%s963_s3 + $0x20] sm:$0xff]  ;;  %v194_v15 = vld [vmem:[%s963_s3 + $0x38] sm:$0xff]  ;;  %s741_s3 = smov 64   ;;  %v317_v41 = vld [vmem:[%s967_s7 + $0x8] sm:$0xff] }
  0x61   :  { %503 = vmatprep.mubr.msk.f32.mxu0 %vm738_vm0, %v737_v0  ;;  %v513_v13 = vpack.c.bf16 %v192_v12, %v191_v11  ;;  %v516_v16 = vpack.c.bf16 %v194_v15, %v193_v14  ;;  %v96_v17 = vld [vmem:[#allocation8] sm:$0x3]  ;;  %v448_v18 = vld [vmem:[#allocation2] ss:$0 sm:$0xff]  ;;  %v450_v25 = vld [vmem:[#allocation5] ss:$0 sm:$0xff] }
  0x62   :  { %508 = vmatpush3.bf16.msra.mxu1 %v507_v8  ;;  %284 = vrot.lane.b32.xlu1 %v96_v17, %s740_s22  ;;  %v316_v40 = vld [vmem:[%s967_s7] sm:$0xff]  ;;  %v318_v42 = vld [vmem:[%s967_s7 + $0x10] sm:$0xff]  ;;  %v319_v44 = vld [vmem:[%s967_s7 + $0x18] sm:$0xff]  ;;  %s743_s7 = smov [#allocation12]  }
  0x63   :  { %509 = vmatprep.subr.bf16.mxu1 %v739_v1  ;;  %v519_v43 = vpack.c.bf16 %v317_v41, %v316_v40  ;;  %v522_v45 = vpack.c.bf16 %v319_v44, %v318_v42  ;;  %s420_s4 = sshll.u32 %s743_s7, 4  ;;  %s421_s4 = int_to_ptr.vmem [resolvable:$true] %s420_s4 }
  0x64   :  { %s656_s18 = scalar_lea.vmem %s421_s4, 32  ;;  %p661_p13 = scmp.lt.s32.totalorder %s421_s4, %s421_s4 }
  0x65   :  { %520 = vmatpush3.bf16.msra.mxu0 %v519_v43  ;;  %p657_p12 = scmp.ne.s32.totalorder %s421_s4, %s656_s18  ;;  %p662_p0 = scmp.lt.s32.totalorder %s656_s18, %s656_s18 }
  0x66   :  { %511 = vmatpush3.bf16.msra.mxu1 %v510_v10  ;;  %521 = vmatprep.subr.bf16.mxu0 %v739_v1 }
  0x67   :  { %512 = vmatprep.subr.bf16.mxu1 %v739_v1  ;;  %p663_p1 = por %p662_p0, %p661_p13 }
  0x69   :  { %523 = vmatpush3.bf16.msra.mxu0 %v522_v45  ;;  %p664_p2 = pnand %p663_p1, %p657_p12 }
  0x6a   :  { %514 = vmatpush3.bf16.msra.mxu1 %v513_v13 }
  0x6b   :  { %515 = vmatprep.subr.bf16.mxu1 %v739_v1 }
  0x6e   :  { %517 = vmatpush3.bf16.msra.mxu1 %v516_v16 }
  0xd1   :  { %v183_v22 = vpop.permute.xlu0 %182 }
  0xd4   :  { %v285_v36 = vpop.permute.xlu1 %284 }
 0x133   :  { %v176_v19 = vpop.f32.mrb[0].mxu0 }
 0x134   :  { %v177_v20 = vadd.f32 %v448_v18, %v176_v19  ;;  %v475_v21 = vpop.f32.mrb[1].mxu0 }
 0x136   :  { %v180_v23 = vmax.f32 %v177_v20, 0.0 }
 0x138   :  { %v186_v24 = vsel %vm185_vm2, %v180_v23, %v183_v22 }
 0x139   :  { %493 = vmatmul.mubr.msk.f32.vlgmr.msra.gmra.mrb[0].mxu1 %vm202_vm3, %v186_v24 }
 0x20c   :  { %v272_v26 = vpop.f32.mrb[0].mxu1 }
 0x20d   :  { %v273_v27 = vadd.f32 %v450_v25, %v272_v26  ;;  %v494_v28 = vpop.f32.mrb[1].mxu1 }
 0x20f   :  { %538 = vtanh.f32 %v273_v27  ;;  %v452_v30 = vmul.f32 -1.442695, %v273_v27 }
 0x211   :  { %540 = vpow2.f32 %v452_v30 }
 0x219   :  { %v539_v29 = vpop.eup %538 }
 0x21a   :  { %289 = vrot.lane.b32.xlu0 %v539_v29, %s741_s3 }
 0x21b   :  { %v541_v31 = vpop.eup %540 }
 0x21c   :  { %v279_v32 = vadd.f32 1.0, %v541_v31 }
 0x21e   :  { %542 = vrcp.f32 %v279_v32 }
 0x228   :  { %v543_v33 = vpop.eup %542 }
 0x229   :  { %v287_v37 = vmul.f32 %v543_v33, %v285_v36 }
 0x28c   :  { %v290_v34 = vpop.permute.xlu0 %289 }
 0x28d   :  { %v292_v35 = vmul.f32 %v543_v33, %v290_v34 }
 0x28f   :  { %294 = vrot.lane.b32.xlu1 %v292_v35, %s740_s22 }
 0x301   :  { %v295_v38 = vpop.permute.xlu1 %294 }
 0x302   :  { %v297_v39 = vadd.f32 %v295_v38, %v287_v37 }
 0x304   :  { %544 = vtanh.f32 %v297_v39 }
 0x30e   :  { %v545_v46 = vpop.eup %544 }
 0x30f   :  { %300 = vrot.lane.b32.xlu0 %v545_v46, %s741_s3 }
 0x381   :  { %v301_v47 = vpop.permute.xlu0 %300 }
 0x382   :  { %v303_v48 = vmul.f32 %v543_v33, %v301_v47 }
 0x384   :  { %v315_v49 = vmax.f32 %v303_v48, 0.0  ;;  %311 = vrot.lane.b32.xlu0 %v303_v48, %s740_s22 }
 0x386   :  { %328 = vrot.lane.b32.xlu1 %v315_v49, %s740_s22 }
 0x38a   :  { %305 = vrot.lane.b32.xlu1 %v297_v39, %s742_s21 }
 0x3f6   :  { %v312_v50 = vpop.permute.xlu0 %311 }
 0x3f7   :  { %314 = vst.msk [vmem:[#allocation12] sm:$0x3] %vm308_vm4, %v312_v50 }
 0x3f8   :  { %v329_v51 = vpop.permute.xlu1 %328 }
 0x3f9   :  { %504 = vmatmul.mubr.msk.f32.vlgmr.msra.gmra.mrb[2].mxu0 %vm185_vm2, %v329_v51 }
 0x3fc   :  { %v306_v52 = vpop.permute.xlu1 %305 }
 0x3fd   :  { %309 = vst.msk [vmem:[#allocation14] sm:$0x3] %vm308_vm4, %v306_v52 }
 0x3fe   :  { %667 = shalt.err (!%p664_p2)
}
 0x3ff   :  { %s668_s25 = scalar_lea.hbm %s970_s10, 32 }
 0x400   :  { %p669_p3 = scmp.ne.s32.totalorder %s970_s10, %s668_s25  ;;  %p672_p4 = scmp.lt.u32.totalorder %s668_s25, %s970_s10 }
 0x402   :  { %p674_p5 = pnand %p672_p4, %p669_p3 }
 0x404   :  { %677 = shalt.err (!%p674_p5)
}
 0x405   :  { %423 = dma.vmem_to_hbm [thread:$0]  %s421_s4, 32, %s970_s10, [#allocation13]  }
 0x406   :  { %s744_s29 = smov [#allocation14]  }
 0x407   :  { %s430_s30 = sshll.u32 %s744_s29, 4  ;;  %s431_s30 = int_to_ptr.vmem [resolvable:$true] %s430_s30 }
 0x408   :  { %s678_s12 = scalar_lea.vmem %s431_s30, 32  ;;  %p683_p7 = scmp.lt.s32.totalorder %s431_s30, %s431_s30 }
 0x409   :  { %p679_p6 = scmp.ne.s32.totalorder %s431_s30, %s678_s12  ;;  %p684_p8 = scmp.lt.s32.totalorder %s678_s12, %s678_s12 }
 0x40b   :  { %p685_p9 = por %p684_p8, %p683_p7 }
 0x40d   :  { %p686_p10 = pnand %p685_p9, %p679_p6 }
 0x40f   :  { %689 = shalt.err (!%p686_p10)
}
 0x410   :  { %s690_s6 = scalar_lea.hbm %s971_s11, 32 }
 0x411   :  { %p691_p11 = scmp.ne.s32.totalorder %s971_s11, %s690_s6  ;;  %p694_p12 = scmp.lt.u32.totalorder %s690_s6, %s971_s11 }
 0x413   :  { %p696_p13 = pnand %p694_p12, %p691_p11 }
 0x415   :  { %699 = shalt.err (!%p696_p13)
}
 0x416   :  { %433 = dma.vmem_to_hbm [thread:$0]  %s431_s30, 32, %s971_s11, [#allocation13]   ;;  %v453_v53 = vld [vmem:[#allocation10] ss:$0 sm:$0xff]  ;;  %vm402_vm5 = vcmask 58368  }
 0x417   :  { %s745_s16 = smov [#allocation11]  }
 0x418   :  { %s410_s17 = sshll.u32 %s745_s16, 4  ;;  %s411_s17 = int_to_ptr.vmem [resolvable:$true] %s410_s17 }
 0x419   :  { %s700_s19 = scalar_lea.vmem %s411_s17, 32  ;;  %p705_p1 = scmp.lt.s32.totalorder %s411_s17, %s411_s17 }
 0x41a   :  { %p701_p0 = scmp.ne.s32.totalorder %s411_s17, %s700_s19  ;;  %p706_p2 = scmp.lt.s32.totalorder %s700_s19, %s700_s19 }
 0x41c   :  { %p707_p3 = por %p706_p2, %p705_p1 }
 0x41e   :  { %p708_p4 = pnand %p707_p3, %p701_p0 }
 0x4cc   :  { %v398_v54 = vpop.f32.mrb[2].mxu0 }
 0x4cd   :  { %v399_v55 = vadd.f32 %v453_v53, %v398_v54  ;;  %v505_v56 = vpop.f32.mrb[3].mxu0 }
 0x4cf   :  { %403 = vst.msk [vmem:[#allocation11] sm:$0x3] %vm402_vm5, %v399_v55 }
 0x4d0   :  { %711 = shalt.err (!%p708_p4)
}
 0x4d1   :  { %s712_s11 = scalar_lea.hbm %s969_s9, 32 }
 0x4d2   :  { %p713_p5 = scmp.ne.s32.totalorder %s969_s9, %s712_s11  ;;  %p716_p6 = scmp.lt.u32.totalorder %s712_s11, %s969_s9 }
 0x4d4   :  { %p718_p7 = pnand %p716_p6, %p713_p5 }
 0x4d6   :  { %721 = shalt.err (!%p718_p7)
}
 0x4d7   :  { %413 = dma.vmem_to_hbm [thread:$0]  %s411_s17, 32, %s969_s9, [#allocation4]  }
 0x4d8   :  { %728 = dma.done.wait [#allocation4], 32  }
 0x4d9   :  { %729 = vsyncadd [#allocation4], 4294967264 }
 0x4da   :  { %730 = dma.done.wait [#allocation13], 64  }
 0x4db   :  { %731 = vsyncadd [#allocation13], 4294967232 }
 0x4dc   :  { %443 = vsyncpa [#allocation3], 1 }
 0x4dd   :  { %444 = vsyncpa [#allocation6], 1 }
 0x4de   :  { %445 = vsyncpa [#allocation9], 1 }
 0x4df   :  { %446 = vsyncpa [#allocation4], 1 }
 0x4e0   :  { %447 = vsyncpa [#allocation13], 1 }

</bundles_post_ra>
